<compile_context>
chip_gen: v6e
topology: v6e:2x2x1
jax: 0.10.0
libtpu: 0.0.40
codegen_flags: <defaults>
</compile_context>

<pallas_src>
import functools

import jax
import jax.numpy as jnp
from jax.experimental import pallas as pl
from jax.experimental.pallas import tpu as pltpu


def _round_up(x, m):
    return ((x + m - 1) // m) * m


def _vmem_capacity_bytes():
    """Per-TensorCore VMEM capacity; conservative v7x default if query fails."""
    try:
        return int(pltpu.get_tpu_info().vmem_capacity_bytes)
    except Exception:
        return 64 << 20


_VMEM_CAPACITY = _vmem_capacity_bytes()


# --------------------------------------------------------------------------- #
# Kernel
# --------------------------------------------------------------------------- #
def _autoencoder_kernel(x_ref, we_ref, be_ref, wd_ref, bd_ref, enc_ref, dec_ref):
    # ---- Encoder: h = relu(x @ W_e + b_e) ----
    # Operands stay in their native dtype for the MXU; accumulate in f32.
    h = jnp.dot(x_ref[...], we_ref[...], preferred_element_type=jnp.float32)
    h = jnp.maximum(h + be_ref[...].astype(jnp.float32), 0.0)

    # Single downcast: reused for both the enc store and the decoder matmul.
    h_lo = h.astype(enc_ref.dtype)
    enc_ref[...] = h_lo

    # ---- Decoder: y = sigmoid(h @ W_d + b_d) ----
    y = jnp.dot(h_lo, wd_ref[...], preferred_element_type=jnp.float32)
    y = y + bd_ref[...].astype(jnp.float32)
    # sigmoid(y) = 1 / (1 + exp(-y)); route the divide to the (otherwise idle)
    # EUP with an approximate reciprocal so the VPU is free for the next tile.
    dec_ref[...] = pl.reciprocal(1.0 + jnp.exp(-y), approx=True).astype(dec_ref.dtype)


# --------------------------------------------------------------------------- #
# Tiling / VMEM accounting
# --------------------------------------------------------------------------- #
def _pick_batch_tile(B8, d_in_p, d_hid_p, itemsize, act_budget_bytes, row_align):
    """Batch-tile rows for the streamed activations (x, enc, dec), assuming the
    default 2-deep pipelining on each of the three activation streams."""
    bytes_per_row = itemsize * (2 * d_in_p + d_hid_p)      # x + dec + enc
    tb = act_budget_bytes // (2 * bytes_per_row)           # x2: double buffers
    tb = max(row_align, min(tb, 4096, B8))

    # Megacore (v7x): keep >= 2 grid steps when the batch allows two
    # MXU-aligned tiles, so the "parallel" axis actually uses both TensorCores.
    if B8 >= 2 * 256:
        tb = min(tb, (B8 // 2 // 256) * 256)

    if tb >= B8:
        return B8                                           # single step covers all rows

    # Multi-step: MXU-friendly tile (256 mult.) keeps vmatmul cadence full and
    # stores unmasked; fall back to sublane alignment for very small budgets.
    align = 256 if tb >= 256 else row_align
    tb = (tb // align) * align

    # Rebalance so the last tile is not mostly padding.
    n_steps = -(-B8 // tb)
    tb = min(tb, _round_up(-(-B8 // n_steps), align))
    return max(row_align, tb)


# --------------------------------------------------------------------------- #
# Forward wrapper
# --------------------------------------------------------------------------- #
def _forward_impl(x, w_enc, b_enc, w_dec, b_dec, *, single_buffer_weights):
    """x: [B, D_IN]; w_enc: [D_IN, D_HID]; w_dec: [D_HID, D_IN]; biases [1, D].
    Returns (encoded [B, D_HID], decoded [B, D_IN])."""
    B, D_in = x.shape
    D_hid = w_enc.shape[1]
    dtype = x.dtype
    itemsize = jnp.dtype(dtype).itemsize

    # Lane-dense padding: feature dims -> multiple of 128; batch rows aligned to
    # the packed-sublane size for this dtype (8 f32 / 16 bf16 / 32 int8).
    row_align = max(8, 32 // itemsize)
    D_in_p = _round_up(D_in, 128)
    D_hid_p = _round_up(D_hid, 128)
    B8 = _round_up(max(B, row_align), row_align)

    # ---- VMEM accounting (weights are resident for the whole grid) ----
    weight_buffers = 1 if single_buffer_weights else 2
    weight_buf_bytes = itemsize * (2 * D_in_p * D_hid_p)          # W_e + W_d, one buffer
    bias_buf_bytes = itemsize * 8 * (D_in_p + D_hid_p)            # (1,D) tiles pad to 8 rows
    resident_bytes = weight_buffers * (weight_buf_bytes + bias_buf_bytes)

    budget_total = int(_VMEM_CAPACITY * 0.70)
    act_budget = max(budget_total - resident_bytes, 2 << 20)
    # TODO(synk): if the resident weights alone exceed the VMEM budget (very
    # large D_in/D_hid, esp. v7x 64 MiB/TC), add a feature-dim grid axis so only
    # a weight column-slab is resident per step instead of the full matrices.

    TB = _pick_batch_tile(B8, D_in_p, D_hid_p, itemsize, act_budget, row_align)
    B_p = _round_up(B8, TB)

    act_stream_bytes = 2 * TB * itemsize * (2 * D_in_p + D_hid_p)  # double-buffered x/enc/dec
    needed_bytes = resident_bytes + act_stream_bytes
    vmem_limit = max(32 << 20, int(needed_bytes * 1.2) + (2 << 20))
    vmem_limit = min(vmem_limit, int(_VMEM_CAPACITY * 0.90))

    # Zero-pad inputs / params (zeros are inert in the valid region: padded
    # hidden cols give relu(0)=0; padded output cols are sliced away).
    x_p = jnp.pad(x, ((0, B_p - B), (0, D_in_p - D_in)))
    we_p = jnp.pad(w_enc, ((0, D_in_p - D_in), (0, D_hid_p - D_hid)))
    be_p = jnp.pad(b_enc, ((0, 0), (0, D_hid_p - D_hid)))
    wd_p = jnp.pad(w_dec, ((0, D_hid_p - D_hid), (0, D_in_p - D_in)))
    bd_p = jnp.pad(b_dec, ((0, 0), (0, D_in_p - D_in)))

    grid = (B_p // TB,)

    bytes_accessed = itemsize * (
        B_p * D_in_p            # x streamed in
        + 2 * D_in_p * D_hid_p  # both weights (read once)
        + D_hid_p + D_in_p      # biases
        + B_p * D_hid_p         # encoded out
        + B_p * D_in_p          # decoded out
    )
    cost = pl.CostEstimate(
        flops=4 * B_p * D_in_p * D_hid_p,        # two matmuls
        transcendentals=2 * B_p * D_in_p,        # exp + reciprocal per output elem
        bytes_accessed=bytes_accessed,
    )

    if single_buffer_weights:
        # Resident operands never change across grid steps: single-buffer them
        # to halve their VMEM footprint (biggest win on v7x's 64 MiB/TC).
        const_kwargs = dict(pipeline_mode=pl.Buffered(1))
    else:
        const_kwargs = {}

    in_specs = [
        # Activations stream over the batch grid (default 2-deep pipelining).
        pl.BlockSpec((TB, D_in_p), lambda i: (i, 0)),
        # Weights / biases: constant index_map -> VMEM-resident across steps.
        pl.BlockSpec((D_in_p, D_hid_p), lambda i: (0, 0), **const_kwargs),
        pl.BlockSpec((1, D_hid_p), lambda i: (0, 0), **const_kwargs),
        pl.BlockSpec((D_hid_p, D_in_p), lambda i: (0, 0), **const_kwargs),
        pl.BlockSpec((1, D_in_p), lambda i: (0, 0), **const_kwargs),
    ]

    enc_p, dec_p = pl.pallas_call(
        _autoencoder_kernel,
        out_shape=(
            jax.ShapeDtypeStruct((B_p, D_hid_p), dtype),
            jax.ShapeDtypeStruct((B_p, D_in_p), dtype),
        ),
        grid=grid,
        in_specs=in_specs,
        out_specs=(
            pl.BlockSpec((TB, D_hid_p), lambda i: (i, 0)),
            pl.BlockSpec((TB, D_in_p), lambda i: (i, 0)),
        ),
        compiler_params=pltpu.CompilerParams(
            dimension_semantics=("parallel",),   # batch steps shard across TCs (v7x)
            vmem_limit_bytes=vmem_limit,
        ),
        cost_estimate=cost,
    )(x_p, we_p, be_p, wd_p, bd_p)

    # Slice off padding.
    return enc_p[:B, :D_hid], dec_p[:B, :D_in]


_forward_single_buffered = jax.jit(
    functools.partial(_forward_impl, single_buffer_weights=True))
_forward_double_buffered = jax.jit(
    functools.partial(_forward_impl, single_buffer_weights=False))

_SINGLE_BUFFER_WEIGHTS = True


def autoencoder_forward(x, w_enc, b_enc, w_dec, b_dec):
    """Public entry point: prefers single-buffered resident weights; falls back
    to default double-buffering if pipeline_mode=pl.Buffered(1) is unsupported."""
    global _SINGLE_BUFFER_WEIGHTS
    if _SINGLE_BUFFER_WEIGHTS:
        try:
            return _forward_single_buffered(x, w_enc, b_enc, w_dec, b_dec)
        except Exception:
            _SINGLE_BUFFER_WEIGHTS = False   # fall back (correct, more VMEM)
    return _forward_double_buffered(x, w_enc, b_enc, w_dec, b_dec)


# --------------------------------------------------------------------------- #
# Params / reference
# --------------------------------------------------------------------------- #
def init_params(key, d_in, d_hid, dtype=jnp.float32):
    """Deterministic parameter init (PyTorch Linear shapes, pre-transposed)."""
    k1, k2, k3, k4 = jax.random.split(key, 4)
    # PyTorch stores Linear weight as (out, in); we transpose to (in, out).
    w_enc_pt = jax.random.uniform(k1, (d_hid, d_in), dtype, minval=-0.1, maxval=0.1)
    b_enc_pt = jax.random.uniform(k2, (d_hid,), dtype, minval=-0.1, maxval=0.1)
    w_dec_pt = jax.random.uniform(k3, (d_in, d_hid), dtype, minval=-0.1, maxval=0.1)
    b_dec_pt = jax.random.uniform(k4, (d_in,), dtype, minval=-0.1, maxval=0.1)
    return (w_enc_pt.T, b_enc_pt.reshape(1, d_hid),
            w_dec_pt.T, b_dec_pt.reshape(1, d_in))


def reference_forward(x, w_enc, b_enc, w_dec, b_dec):
    """Pure-JAX reference for correctness check."""
    h = jnp.maximum(x @ w_enc + b_enc, 0.0)
    y = jax.nn.sigmoid(h @ w_dec + b_dec)
    return h, y


if __name__ == "__main__":
    D_IN, D_HID = 32, 8

    key = jax.random.PRNGKey(0)
    kx1, kx2, kp = jax.random.split(key, 3)
    w_enc, b_enc, w_dec, b_dec = init_params(kp, D_IN, D_HID)

    # Small single-tile case and a multi-step-grid case (exercises batch
    # streaming, megacore tile cap and padding slice-off).
    for kx, B in ((kx1, 2), (kx2, 600)):
        x = jax.random.normal(kx, (B, D_IN), jnp.float32)
        encoded, decoded = autoencoder_forward(x, w_enc, b_enc, w_dec, b_dec)
        jax.block_until_ready((encoded, decoded))

        enc_ref, dec_ref = reference_forward(x, w_enc, b_enc, w_dec, b_dec)
        assert encoded.shape == (B, D_HID) and decoded.shape == (B, D_IN)
        assert jnp.allclose(encoded, enc_ref, atol=1e-5, rtol=1e-5)
        # decoded goes through the EUP approximate-reciprocal sigmoid -> looser tol.
        assert jnp.allclose(decoded, dec_ref, atol=5e-3, rtol=0.0)

    print("KERNEL_OK")
</pallas_src>

<mosaic_0001>
module attributes {stable_mosaic.version = 11 : i64} {
  func.func @_autoencoder_kernel(%arg0: i32, %arg1: memref<8x128xf32, #tpu.memory_space<vmem>>, %arg2: memref<128x128xf32, #tpu.memory_space<vmem>>, %arg3: memref<1x128xf32, #tpu.memory_space<vmem>>, %arg4: memref<128x128xf32, #tpu.memory_space<vmem>>, %arg5: memref<1x128xf32, #tpu.memory_space<vmem>>, %arg6: memref<8x128xf32, #tpu.memory_space<vmem>>, %arg7: memref<8x128xf32, #tpu.memory_space<vmem>>) attributes {dimension_semantics = [#tpu.dimension_semantics<parallel>], iteration_bounds = array<i64: 1>, scalar_prefetch = 0 : i64, scratch_operands = 0 : i64, tpu.core_type = #tpu.core_type<tc>, window_params = [{transform_indices = @transform_0, window_bounds = array<i64: 8, 128>}, {pipeline_mode = #tpu.pipeline_mode<synchronous>, transform_indices = @transform_1, window_bounds = array<i64: 128, 128>}, {pipeline_mode = #tpu.pipeline_mode<synchronous>, transform_indices = @transform_2, window_bounds = array<i64: 1, 128>}, {pipeline_mode = #tpu.pipeline_mode<synchronous>, transform_indices = @transform_3, window_bounds = array<i64: 128, 128>}, {pipeline_mode = #tpu.pipeline_mode<synchronous>, transform_indices = @transform_4, window_bounds = array<i64: 1, 128>}, {transform_indices = @transform_5, window_bounds = array<i64: 8, 128>}, {transform_indices = @transform_6, window_bounds = array<i64: 8, 128>}]} {
    %c0 = arith.constant 0 : index
    %c0_0 = arith.constant 0 : index
    %0 = vector.load %arg1[%c0, %c0_0] : memref<8x128xf32, #tpu.memory_space<vmem>>, vector<8x128xf32>
    %c0_1 = arith.constant 0 : index
    %c0_2 = arith.constant 0 : index
    %1 = vector.load %arg2[%c0_1, %c0_2] : memref<128x128xf32, #tpu.memory_space<vmem>>, vector<128x128xf32>
    %cst = arith.constant dense<0.000000e+00> : vector<8x128xf32>
    %2 = tpu.matmul %0, %1, %cst {dimension_numbers = #tpu.dot_dimension_numbers<[1], [0], [0], [1], [0, 0, 1, 1], [], []>} : vector<8x128xf32>, vector<128x128xf32>, vector<8x128xf32> -> vector<8x128xf32>
    %c0_3 = arith.constant 0 : index
    %c0_4 = arith.constant 0 : index
    %3 = vector.load %arg3[%c0_3, %c0_4] : memref<1x128xf32, #tpu.memory_space<vmem>>, vector<1x128xf32>
    %4 = vector.broadcast %3 : vector<1x128xf32> to vector<8x128xf32>
    %5 = arith.addf %2, %4 : vector<8x128xf32>
    %cst_5 = arith.constant 0.000000e+00 : f32
    %6 = vector.broadcast %cst_5 : f32 to vector<8x128xf32>
    %7 = arith.maximumf %5, %6 : vector<8x128xf32>
    %c0_6 = arith.constant 0 : index
    %c0_7 = arith.constant 0 : index
    %8 = vector.load %arg6[%c0_6, %c0_7] : memref<8x128xf32, #tpu.memory_space<vmem>>, vector<8x128xf32>
    tpu.vector_store %arg6[%c0_6, %c0_7], %7 {strides = array<i32>} : memref<8x128xf32, #tpu.memory_space<vmem>>, vector<8x128xf32>,
    %c0_8 = arith.constant 0 : index
    %c0_9 = arith.constant 0 : index
    %9 = vector.load %arg4[%c0_8, %c0_9] : memref<128x128xf32, #tpu.memory_space<vmem>>, vector<128x128xf32>
    %cst_10 = arith.constant dense<0.000000e+00> : vector<8x128xf32>
    %10 = tpu.matmul %7, %9, %cst_10 {dimension_numbers = #tpu.dot_dimension_numbers<[1], [0], [0], [1], [0, 0, 1, 1], [], []>} : vector<8x128xf32>, vector<128x128xf32>, vector<8x128xf32> -> vector<8x128xf32>
    %c0_11 = arith.constant 0 : index
    %c0_12 = arith.constant 0 : index
    %11 = vector.load %arg5[%c0_11, %c0_12] : memref<1x128xf32, #tpu.memory_space<vmem>>, vector<1x128xf32>
    %12 = vector.broadcast %11 : vector<1x128xf32> to vector<8x128xf32>
    %13 = arith.addf %10, %12 : vector<8x128xf32>
    %cst_13 = arith.constant 0.000000e+00 : f32
    %14 = vector.broadcast %cst_13 : f32 to vector<8x128xf32>
    %15 = arith.subf %14, %13 : vector<8x128xf32>
    %16 = math.exp %15 : vector<8x128xf32>
    %cst_14 = arith.constant 1.000000e+00 : f32
    %17 = vector.broadcast %cst_14 : f32 to vector<8x128xf32>
    %18 = arith.addf %17, %16 : vector<8x128xf32>
    %19 = tpu.reciprocal %18 {approx = true} : vector<8x128xf32> -> vector<8x128xf32>
    %c0_15 = arith.constant 0 : index
    %c0_16 = arith.constant 0 : index
    %20 = vector.load %arg7[%c0_15, %c0_16] : memref<8x128xf32, #tpu.memory_space<vmem>>, vector<8x128xf32>
    tpu.vector_store %arg7[%c0_15, %c0_16], %19 {strides = array<i32>} : memref<8x128xf32, #tpu.memory_space<vmem>>, vector<8x128xf32>,
    return
  }
  func.func @transform_0(%arg0: i32) -> (i32, i32) {
    %c0_i32 = arith.constant 0 : i32
    %c0_i32_0 = arith.constant 0 : i32
    return %arg0, %c0_i32 : i32, i32
  }
  func.func @transform_1(%arg0: i32) -> (i32, i32) {
    %c0_i32 = arith.constant 0 : i32
    %c0_i32_0 = arith.constant 0 : i32
    %c0_i32_1 = arith.constant 0 : i32
    return %c0_i32, %c0_i32_0 : i32, i32
  }
  func.func @transform_2(%arg0: i32) -> (i32, i32) {
    %c0_i32 = arith.constant 0 : i32
    %c0_i32_0 = arith.constant 0 : i32
    %c0_i32_1 = arith.constant 0 : i32
    return %c0_i32, %c0_i32_0 : i32, i32
  }
  func.func @transform_3(%arg0: i32) -> (i32, i32) {
    %c0_i32 = arith.constant 0 : i32
    %c0_i32_0 = arith.constant 0 : i32
    %c0_i32_1 = arith.constant 0 : i32
    return %c0_i32, %c0_i32_0 : i32, i32
  }
  func.func @transform_4(%arg0: i32) -> (i32, i32) {
    %c0_i32 = arith.constant 0 : i32
    %c0_i32_0 = arith.constant 0 : i32
    %c0_i32_1 = arith.constant 0 : i32
    return %c0_i32, %c0_i32_0 : i32, i32
  }
  func.func @transform_5(%arg0: i32) -> (i32, i32) {
    %c0_i32 = arith.constant 0 : i32
    %c0_i32_0 = arith.constant 0 : i32
    return %arg0, %c0_i32 : i32, i32
  }
  func.func @transform_6(%arg0: i32) -> (i32, i32) {
    %c0_i32 = arith.constant 0 : i32
    %c0_i32_0 = arith.constant 0 : i32
    return %arg0, %c0_i32 : i32, i32
  }
}

module attributes {stable_mosaic.version = 11 : i64} {
  func.func @_autoencoder_kernel(%arg0: i32, %arg1: memref<8x128xf32, #tpu.memory_space<vmem>>, %arg2: memref<128x128xf32, #tpu.memory_space<vmem>>, %arg3: memref<1x128xf32, #tpu.memory_space<vmem>>, %arg4: memref<128x128xf32, #tpu.memory_space<vmem>>, %arg5: memref<1x128xf32, #tpu.memory_space<vmem>>, %arg6: memref<8x128xf32, #tpu.memory_space<vmem>>, %arg7: memref<8x128xf32, #tpu.memory_space<vmem>>) attributes {dimension_semantics = [#tpu.dimension_semantics<parallel>], iteration_bounds = array<i64: 1>, scalar_prefetch = 0 : i64, scratch_operands = 0 : i64, tpu.core_type = #tpu.core_type<tc>, window_params = [{transform_indices = @transform_0, window_bounds = array<i64: 8, 128>}, {pipeline_mode = #tpu.pipeline_mode<synchronous>, transform_indices = @transform_1, window_bounds = array<i64: 128, 128>}, {pipeline_mode = #tpu.pipeline_mode<synchronous>, transform_indices = @transform_2, window_bounds = array<i64: 1, 128>}, {pipeline_mode = #tpu.pipeline_mode<synchronous>, transform_indices = @transform_3, window_bounds = array<i64: 128, 128>}, {pipeline_mode = #tpu.pipeline_mode<synchronous>, transform_indices = @transform_4, window_bounds = array<i64: 1, 128>}, {transform_indices = @transform_5, window_bounds = array<i64: 8, 128>}, {transform_indices = @transform_6, window_bounds = array<i64: 8, 128>}]} {
    %c0 = arith.constant 0 : index
    %c0_0 = arith.constant 0 : index
    %0 = vector.load %arg1[%c0, %c0_0] : memref<8x128xf32, #tpu.memory_space<vmem>>, vector<8x128xf32>
    %c0_1 = arith.constant 0 : index
    %c0_2 = arith.constant 0 : index
    %1 = vector.load %arg2[%c0_1, %c0_2] : memref<128x128xf32, #tpu.memory_space<vmem>>, vector<128x128xf32>
    %cst = arith.constant dense<0.000000e+00> : vector<8x128xf32>
    %2 = tpu.matmul %0, %1, %cst {dimension_numbers = #tpu.dot_dimension_numbers<[1], [0], [0], [1], [0, 0, 1, 1], [], []>} : vector<8x128xf32>, vector<128x128xf32>, vector<8x128xf32> -> vector<8x128xf32>
    %c0_3 = arith.constant 0 : index
    %c0_4 = arith.constant 0 : index
    %3 = vector.load %arg3[%c0_3, %c0_4] : memref<1x128xf32, #tpu.memory_space<vmem>>, vector<1x128xf32>
    %4 = vector.broadcast %3 : vector<1x128xf32> to vector<8x128xf32>
    %5 = arith.addf %2, %4 : vector<8x128xf32>
    %cst_5 = arith.constant 0.000000e+00 : f32
    %6 = vector.broadcast %cst_5 : f32 to vector<8x128xf32>
    %7 = arith.maximumf %5, %6 : vector<8x128xf32>
    %c0_6 = arith.constant 0 : index
    %c0_7 = arith.constant 0 : index
    %8 = vector.load %arg6[%c0_6, %c0_7] : memref<8x128xf32, #tpu.memory_space<vmem>>, vector<8x128xf32>
    tpu.vector_store %arg6[%c0_6, %c0_7], %7 {strides = array<i32>} : memref<8x128xf32, #tpu.memory_space<vmem>>, vector<8x128xf32>,
    %c0_8 = arith.constant 0 : index
    %c0_9 = arith.constant 0 : index
    %9 = vector.load %arg4[%c0_8, %c0_9] : memref<128x128xf32, #tpu.memory_space<vmem>>, vector<128x128xf32>
    %cst_10 = arith.constant dense<0.000000e+00> : vector<8x128xf32>
    %10 = tpu.matmul %7, %9, %cst_10 {dimension_numbers = #tpu.dot_dimension_numbers<[1], [0], [0], [1], [0, 0, 1, 1], [], []>} : vector<8x128xf32>, vector<128x128xf32>, vector<8x128xf32> -> vector<8x128xf32>
    %c0_11 = arith.constant 0 : index
    %c0_12 = arith.constant 0 : index
    %11 = vector.load %arg5[%c0_11, %c0_12] : memref<1x128xf32, #tpu.memory_space<vmem>>, vector<1x128xf32>
    %12 = vector.broadcast %11 : vector<1x128xf32> to vector<8x128xf32>
    %13 = arith.addf %10, %12 : vector<8x128xf32>
    %cst_13 = arith.constant 0.000000e+00 : f32
    %14 = vector.broadcast %cst_13 : f32 to vector<8x128xf32>
    %15 = arith.subf %14, %13 : vector<8x128xf32>
    %16 = math.exp %15 : vector<8x128xf32>
    %cst_14 = arith.constant 1.000000e+00 : f32
    %17 = vector.broadcast %cst_14 : f32 to vector<8x128xf32>
    %18 = arith.addf %17, %16 : vector<8x128xf32>
    %19 = tpu.reciprocal %18 {approx = true} : vector<8x128xf32> -> vector<8x128xf32>
    %c0_15 = arith.constant 0 : index
    %c0_16 = arith.constant 0 : index
    %20 = vector.load %arg7[%c0_15, %c0_16] : memref<8x128xf32, #tpu.memory_space<vmem>>, vector<8x128xf32>
    tpu.vector_store %arg7[%c0_15, %c0_16], %19 {strides = array<i32>} : memref<8x128xf32, #tpu.memory_space<vmem>>, vector<8x128xf32>,
    return
  }
  func.func @transform_0(%arg0: i32) -> (i32, i32) {
    %c0_i32 = arith.constant 0 : i32
    %c0_i32_0 = arith.constant 0 : i32
    return %arg0, %c0_i32 : i32, i32
  }
  func.func @transform_1(%arg0: i32) -> (i32, i32) {
    %c0_i32 = arith.constant 0 : i32
    %c0_i32_0 = arith.constant 0 : i32
    %c0_i32_1 = arith.constant 0 : i32
    return %c0_i32, %c0_i32_0 : i32, i32
  }
  func.func @transform_2(%arg0: i32) -> (i32, i32) {
    %c0_i32 = arith.constant 0 : i32
    %c0_i32_0 = arith.constant 0 : i32
    %c0_i32_1 = arith.constant 0 : i32
    return %c0_i32, %c0_i32_0 : i32, i32
  }
  func.func @transform_3(%arg0: i32) -> (i32, i32) {
    %c0_i32 = arith.constant 0 : i32
    %c0_i32_0 = arith.constant 0 : i32
    %c0_i32_1 = arith.constant 0 : i32
    return %c0_i32, %c0_i32_0 : i32, i32
  }
  func.func @transform_4(%arg0: i32) -> (i32, i32) {
    %c0_i32 = arith.constant 0 : i32
    %c0_i32_0 = arith.constant 0 : i32
    %c0_i32_1 = arith.constant 0 : i32
    return %c0_i32, %c0_i32_0 : i32, i32
  }
  func.func @transform_5(%arg0: i32) -> (i32, i32) {
    %c0_i32 = arith.constant 0 : i32
    %c0_i32_0 = arith.constant 0 : i32
    return %arg0, %c0_i32 : i32, i32
  }
  func.func @transform_6(%arg0: i32) -> (i32, i32) {
    %c0_i32 = arith.constant 0 : i32
    %c0_i32_0 = arith.constant 0 : i32
    return %arg0, %c0_i32 : i32, i32
  }
}

</mosaic_0001>

<bundles_post_ra>
// kernel: _forward_impl.1
= control target key start
LH: loop header
LB: loop body
LE: loop exit
PB: predicated region body
PF: predicated region fallthrough
CT: control target
= control target key end

     0   :  { %v337_v0 = vmov 0.0   ;;  %vm338_vm0 = vmmov 0   ;;  %s519_s1 = inlined_call_operand.vmem [shape: f32[128,128], index: 1, kind: input, shape index: {}]   ;;  %s520_s3 = inlined_call_operand.vmem [shape: f32[128,128], index: 3, kind: input, shape index: {}]   ;;  %s521_s0 = inlined_call_operand.vmem [shape: f32[8,128], index: 0, kind: input, shape index: {}]   ;;  %s522_s2 = inlined_call_operand.vmem [shape: f32[1,128], index: 2, kind: input, shape index: {}]   ;;  %s523_s5 = inlined_call_operand.vmem [shape: f32[8,128], index: 5, kind: output, shape index: {0}]   ;;  %s524_s4 = inlined_call_operand.vmem [shape: f32[1,128], index: 4, kind: input, shape index: {}]   ;;  %s525_s6 = inlined_call_operand.vmem [shape: f32[8,128], index: 6, kind: output, shape index: {1}]  }
   0x1   :  { %261 = vmatprep.subr.mxu0 %v337_v0  ;;  %v38_v1 = vld [vmem:[%s519_s1 + $0x78] sm:$0xff]  ;;  %v37_v2 = vld [vmem:[%s519_s1 + $0x70] sm:$0xff]  ;;  %293 = vmatprep.mubr.msk.f32.mxu0 %vm338_vm0, %v337_v0  ;;  %v36_v3 = vld [vmem:[%s519_s1 + $0x68] sm:$0xff] }
   0x2   :  { %262 = vmatpush3.msra.mxu0 %v38_v1  ;;  %296 = vmatprep.subr.mxu1 %v337_v0  ;;  %v35_v4 = vld [vmem:[%s519_s1 + $0x60] sm:$0xff]  ;;  %v133_v5 = vld [vmem:[%s520_s3 + $0x78] sm:$0xff]  ;;  %v132_v7 = vld [vmem:[%s520_s3 + $0x70] sm:$0xff] }
   0x3   :  { %263 = vmatprep.subr.mxu0 %v337_v0  ;;  %328 = vmatprep.mubr.msk.f32.mxu1 %vm338_vm0, %v337_v0  ;;  %v34_v6 = vld [vmem:[%s519_s1 + $0x58] sm:$0xff]  ;;  %v131_v8 = vld [vmem:[%s520_s3 + $0x68] sm:$0xff]  ;;  %v33_v9 = vld [vmem:[%s519_s1 + $0x50] sm:$0xff] }
   0x4   :  { %264 = vmatpush3.msra.mxu0 %v37_v2  ;;  %297 = vmatpush3.msra.mxu1 %v133_v5  ;;  %v130_v10 = vld [vmem:[%s520_s3 + $0x60] sm:$0xff]  ;;  %v32_v11 = vld [vmem:[%s519_s1 + $0x48] sm:$0xff]  ;;  %v129_v12 = vld [vmem:[%s520_s3 + $0x58] sm:$0xff] }
   0x5   :  { %265 = vmatprep.subr.mxu0 %v337_v0  ;;  %298 = vmatprep.subr.mxu1 %v337_v0  ;;  %v31_v13 = vld [vmem:[%s519_s1 + $0x40] sm:$0xff]  ;;  %v128_v14 = vld [vmem:[%s520_s3 + $0x50] sm:$0xff]  ;;  %v30_v15 = vld [vmem:[%s519_s1 + $0x38] sm:$0xff] }
   0x6   :  { %266 = vmatpush3.msra.mxu0 %v36_v3  ;;  %299 = vmatpush3.msra.mxu1 %v132_v7  ;;  %v127_v16 = vld [vmem:[%s520_s3 + $0x48] sm:$0xff]  ;;  %v29_v17 = vld [vmem:[%s519_s1 + $0x30] sm:$0xff]  ;;  %v126_v18 = vld [vmem:[%s520_s3 + $0x40] sm:$0xff] }
   0x7   :  { %267 = vmatprep.subr.mxu0 %v337_v0  ;;  %300 = vmatprep.subr.mxu1 %v337_v0  ;;  %v28_v19 = vld [vmem:[%s519_s1 + $0x28] sm:$0xff]  ;;  %v125_v20 = vld [vmem:[%s520_s3 + $0x38] sm:$0xff]  ;;  %v27_v21 = vld [vmem:[%s519_s1 + $0x20] sm:$0xff] }
   0x8   :  { %268 = vmatpush3.msra.mxu0 %v35_v4  ;;  %301 = vmatpush3.msra.mxu1 %v131_v8  ;;  %v124_v22 = vld [vmem:[%s520_s3 + $0x30] sm:$0xff]  ;;  %v26_v23 = vld [vmem:[%s519_s1 + $0x18] sm:$0xff]  ;;  %v123_v24 = vld [vmem:[%s520_s3 + $0x28] sm:$0xff] }
   0x9   :  { %269 = vmatprep.subr.mxu0 %v337_v0  ;;  %302 = vmatprep.subr.mxu1 %v337_v0  ;;  %v25_v25 = vld [vmem:[%s519_s1 + $0x10] sm:$0xff]  ;;  %v122_v26 = vld [vmem:[%s520_s3 + $0x20] sm:$0xff]  ;;  %v24_v27 = vld [vmem:[%s519_s1 + $0x8] sm:$0xff] }
   0xa   :  { %270 = vmatpush3.msra.mxu0 %v34_v6  ;;  %303 = vmatpush3.msra.mxu1 %v130_v10  ;;  %v121_v28 = vld [vmem:[%s520_s3 + $0x18] sm:$0xff]  ;;  %v23_v29 = vld [vmem:[%s519_s1] sm:$0xff]  ;;  %v120_v31 = vld [vmem:[%s520_s3 + $0x10] sm:$0xff] }
   0xb   :  { %271 = vmatprep.subr.mxu0 %v337_v0  ;;  %304 = vmatprep.subr.mxu1 %v337_v0  ;;  %v22_v30 = vld [vmem:[%s521_s0] sm:$0xff]  ;;  %v119_v32 = vld [vmem:[%s520_s3 + $0x8] sm:$0xff] }
   0xc   :  { %272 = vmatpush3.msra.mxu0 %v33_v9  ;;  %305 = vmatpush3.msra.mxu1 %v129_v12  ;;  %v118_v33 = vld [vmem:[%s520_s3] sm:$0xff] }
   0xd   :  { %273 = vmatprep.subr.mxu0 %v337_v0  ;;  %306 = vmatprep.subr.mxu1 %v337_v0  ;;  %v225_v34 = vld [vmem:[%s522_s2] ss:$0 sm:$0xff] }
   0xe   :  { %274 = vmatpush3.msra.mxu0 %v32_v11  ;;  %307 = vmatpush3.msra.mxu1 %v128_v14  ;;  %v226_v39 = vld [vmem:[%s524_s4] ss:$0 sm:$0xff] }
   0xf   :  { %275 = vmatprep.subr.mxu0 %v337_v0  ;;  %308 = vmatprep.subr.mxu1 %v337_v0 }
  0x10   :  { %276 = vmatpush3.msra.mxu0 %v31_v13  ;;  %309 = vmatpush3.msra.mxu1 %v127_v16 }
  0x11   :  { %277 = vmatprep.subr.mxu0 %v337_v0  ;;  %310 = vmatprep.subr.mxu1 %v337_v0 }
  0x12   :  { %278 = vmatpush3.msra.mxu0 %v30_v15  ;;  %311 = vmatpush3.msra.mxu1 %v126_v18 }
  0x13   :  { %279 = vmatprep.subr.mxu0 %v337_v0  ;;  %312 = vmatprep.subr.mxu1 %v337_v0 }
  0x14   :  { %280 = vmatpush3.msra.mxu0 %v29_v17  ;;  %313 = vmatpush3.msra.mxu1 %v125_v20 }
  0x15   :  { %281 = vmatprep.subr.mxu0 %v337_v0  ;;  %314 = vmatprep.subr.mxu1 %v337_v0 }
  0x16   :  { %282 = vmatpush3.msra.mxu0 %v28_v19  ;;  %315 = vmatpush3.msra.mxu1 %v124_v22 }
  0x17   :  { %283 = vmatprep.subr.mxu0 %v337_v0  ;;  %316 = vmatprep.subr.mxu1 %v337_v0 }
  0x18   :  { %284 = vmatpush3.msra.mxu0 %v27_v21  ;;  %317 = vmatpush3.msra.mxu1 %v123_v24 }
  0x19   :  { %285 = vmatprep.subr.mxu0 %v337_v0  ;;  %318 = vmatprep.subr.mxu1 %v337_v0 }
  0x1a   :  { %286 = vmatpush3.msra.mxu0 %v26_v23  ;;  %319 = vmatpush3.msra.mxu1 %v122_v26 }
  0x1b   :  { %287 = vmatprep.subr.mxu0 %v337_v0  ;;  %320 = vmatprep.subr.mxu1 %v337_v0 }
  0x1c   :  { %288 = vmatpush3.msra.mxu0 %v25_v25  ;;  %321 = vmatpush3.msra.mxu1 %v121_v28 }
  0x1d   :  { %289 = vmatprep.subr.mxu0 %v337_v0  ;;  %322 = vmatprep.subr.mxu1 %v337_v0 }
  0x1e   :  { %290 = vmatpush3.msra.mxu0 %v24_v27  ;;  %323 = vmatpush3.msra.mxu1 %v120_v31 }
  0x1f   :  { %291 = vmatprep.subr.mxu0 %v337_v0  ;;  %324 = vmatprep.subr.mxu1 %v337_v0 }
  0x20   :  { %292 = vmatpush3.msra.mxu0 %v23_v29  ;;  %325 = vmatpush3.msra.mxu1 %v119_v32 }
  0x21   :  { %294 = vmatmul.mubr.f32.vlgmr.msra.gmra.mxu0 %v22_v30  ;;  %326 = vmatprep.subr.mxu1 %v337_v0 }
  0x22   :  { %327 = vmatpush3.msra.mxu1 %v118_v33 }
  0xe1   :  { %v112_v35 = vpop.f32.mrf.mxu0 }
  0xe2   :  { %v113_v36 = vadd.f32 %v225_v34, %v112_v35 }
  0xe3   :  { %v295_v37 = vpop.f32.mrf.mxu0 }
  0xe4   :  { %v116_v38 = vmax.f32 %v113_v36, 0.0 }
  0xe6   :  { %117 = vst [vmem:[%s523_s5] sm:$0xff] %v116_v38  ;;  %329 = vmatmul.mubr.f32.vlgmr.msra.gmra.mxu1 %v116_v38 }
 0x1a6   :  { %v207_v40 = vpop.f32.mrf.mxu1 }
 0x1a7   :  { %v208_v41 = vadd.f32 %v226_v39, %v207_v40 }
 0x1a8   :  { %v330_v42 = vpop.f32.mrf.mxu1 }
 0x1a9   :  { %v211_v43 = vsub.f32 0.0, %v208_v41 }
 0x1ab   :  { %v212_v44 = vmul.f32 1.442695, %v211_v43 }
 0x1ad   :  { %333 = vpow2.f32 %v212_v44 }
 0x1ba   :  { %v334_v45 = vpop.eup %333 }
 0x1bb   :  { %v214_v46 = vadd.f32 1.0, %v334_v45 }
 0x1bd   :  { %335 = vrcp.f32 %v214_v46 }
 0x1ca   :  { %v336_v47 = vpop.eup %335 }
 0x1cb   :  { %216 = vst [vmem:[%s525_s6] sm:$0xff] %v336_v47 }

// kernel: _forward_impl.1
= control target key start
LH: loop header
LB: loop body
LE: loop exit
PB: predicated region body
PF: predicated region fallthrough
CT: control target
= control target key end

     0   :  { %v337_v0 = vmov 0.0   ;;  %vm338_vm0 = vmmov 0   ;;  %s519_s1 = inlined_call_operand.vmem [shape: f32[128,128], index: 1, kind: input, shape index: {}]   ;;  %s520_s3 = inlined_call_operand.vmem [shape: f32[128,128], index: 3, kind: input, shape index: {}]   ;;  %s521_s0 = inlined_call_operand.vmem [shape: f32[8,128], index: 0, kind: input, shape index: {}]   ;;  %s522_s2 = inlined_call_operand.vmem [shape: f32[1,128], index: 2, kind: input, shape index: {}]   ;;  %s523_s5 = inlined_call_operand.vmem [shape: f32[8,128], index: 5, kind: output, shape index: {0}]   ;;  %s524_s4 = inlined_call_operand.vmem [shape: f32[1,128], index: 4, kind: input, shape index: {}]   ;;  %s525_s6 = inlined_call_operand.vmem [shape: f32[8,128], index: 6, kind: output, shape index: {1}]  }
   0x1   :  { %261 = vmatprep.subr.mxu0 %v337_v0  ;;  %v38_v1 = vld [vmem:[%s519_s1 + $0x78] sm:$0xff]  ;;  %v37_v2 = vld [vmem:[%s519_s1 + $0x70] sm:$0xff]  ;;  %293 = vmatprep.mubr.msk.f32.mxu0 %vm338_vm0, %v337_v0  ;;  %v36_v3 = vld [vmem:[%s519_s1 + $0x68] sm:$0xff] }
   0x2   :  { %262 = vmatpush3.msra.mxu0 %v38_v1  ;;  %296 = vmatprep.subr.mxu1 %v337_v0  ;;  %v35_v4 = vld [vmem:[%s519_s1 + $0x60] sm:$0xff]  ;;  %v133_v5 = vld [vmem:[%s520_s3 + $0x78] sm:$0xff]  ;;  %v132_v7 = vld [vmem:[%s520_s3 + $0x70] sm:$0xff] }
   0x3   :  { %263 = vmatprep.subr.mxu0 %v337_v0  ;;  %328 = vmatprep.mubr.msk.f32.mxu1 %vm338_vm0, %v337_v0  ;;  %v34_v6 = vld [vmem:[%s519_s1 + $0x58] sm:$0xff]  ;;  %v131_v8 = vld [vmem:[%s520_s3 + $0x68] sm:$0xff]  ;;  %v33_v9 = vld [vmem:[%s519_s1 + $0x50] sm:$0xff] }
   0x4   :  { %264 = vmatpush3.msra.mxu0 %v37_v2  ;;  %297 = vmatpush3.msra.mxu1 %v133_v5  ;;  %v130_v10 = vld [vmem:[%s520_s3 + $0x60] sm:$0xff]  ;;  %v32_v11 = vld [vmem:[%s519_s1 + $0x48] sm:$0xff]  ;;  %v129_v12 = vld [vmem:[%s520_s3 + $0x58] sm:$0xff] }
   0x5   :  { %265 = vmatprep.subr.mxu0 %v337_v0  ;;  %298 = vmatprep.subr.mxu1 %v337_v0  ;;  %v31_v13 = vld [vmem:[%s519_s1 + $0x40] sm:$0xff]  ;;  %v128_v14 = vld [vmem:[%s520_s3 + $0x50] sm:$0xff]  ;;  %v30_v15 = vld [vmem:[%s519_s1 + $0x38] sm:$0xff] }
   0x6   :  { %266 = vmatpush3.msra.mxu0 %v36_v3  ;;  %299 = vmatpush3.msra.mxu1 %v132_v7  ;;  %v127_v16 = vld [vmem:[%s520_s3 + $0x48] sm:$0xff]  ;;  %v29_v17 = vld [vmem:[%s519_s1 + $0x30] sm:$0xff]  ;;  %v126_v18 = vld [vmem:[%s520_s3 + $0x40] sm:$0xff] }
   0x7   :  { %267 = vmatprep.subr.mxu0 %v337_v0  ;;  %300 = vmatprep.subr.mxu1 %v337_v0  ;;  %v28_v19 = vld [vmem:[%s519_s1 + $0x28] sm:$0xff]  ;;  %v125_v20 = vld [vmem:[%s520_s3 + $0x38] sm:$0xff]  ;;  %v27_v21 = vld [vmem:[%s519_s1 + $0x20] sm:$0xff] }
   0x8   :  { %268 = vmatpush3.msra.mxu0 %v35_v4  ;;  %301 = vmatpush3.msra.mxu1 %v131_v8  ;;  %v124_v22 = vld [vmem:[%s520_s3 + $0x30] sm:$0xff]  ;;  %v26_v23 = vld [vmem:[%s519_s1 + $0x18] sm:$0xff]  ;;  %v123_v24 = vld [vmem:[%s520_s3 + $0x28] sm:$0xff] }
   0x9   :  { %269 = vmatprep.subr.mxu0 %v337_v0  ;;  %302 = vmatprep.subr.mxu1 %v337_v0  ;;  %v25_v25 = vld [vmem:[%s519_s1 + $0x10] sm:$0xff]  ;;  %v122_v26 = vld [vmem:[%s520_s3 + $0x20] sm:$0xff]  ;;  %v24_v27 = vld [vmem:[%s519_s1 + $0x8] sm:$0xff] }
   0xa   :  { %270 = vmatpush3.msra.mxu0 %v34_v6  ;;  %303 = vmatpush3.msra.mxu1 %v130_v10  ;;  %v121_v28 = vld [vmem:[%s520_s3 + $0x18] sm:$0xff]  ;;  %v23_v29 = vld [vmem:[%s519_s1] sm:$0xff]  ;;  %v120_v31 = vld [vmem:[%s520_s3 + $0x10] sm:$0xff] }
   0xb   :  { %271 = vmatprep.subr.mxu0 %v337_v0  ;;  %304 = vmatprep.subr.mxu1 %v337_v0  ;;  %v22_v30 = vld [vmem:[%s521_s0] sm:$0xff]  ;;  %v119_v32 = vld [vmem:[%s520_s3 + $0x8] sm:$0xff] }
   0xc   :  { %272 = vmatpush3.msra.mxu0 %v33_v9  ;;  %305 = vmatpush3.msra.mxu1 %v129_v12  ;;  %v118_v33 = vld [vmem:[%s520_s3] sm:$0xff] }
   0xd   :  { %273 = vmatprep.subr.mxu0 %v337_v0  ;;  %306 = vmatprep.subr.mxu1 %v337_v0  ;;  %v225_v34 = vld [vmem:[%s522_s2] ss:$0 sm:$0xff] }
   0xe   :  { %274 = vmatpush3.msra.mxu0 %v32_v11  ;;  %307 = vmatpush3.msra.mxu1 %v128_v14  ;;  %v226_v39 = vld [vmem:[%s524_s4] ss:$0 sm:$0xff] }
   0xf   :  { %275 = vmatprep.subr.mxu0 %v337_v0  ;;  %308 = vmatprep.subr.mxu1 %v337_v0 }
  0x10   :  { %276 = vmatpush3.msra.mxu0 %v31_v13  ;;  %309 = vmatpush3.msra.mxu1 %v127_v16 }
  0x11   :  { %277 = vmatprep.subr.mxu0 %v337_v0  ;;  %310 = vmatprep.subr.mxu1 %v337_v0 }
  0x12   :  { %278 = vmatpush3.msra.mxu0 %v30_v15  ;;  %311 = vmatpush3.msra.mxu1 %v126_v18 }
  0x13   :  { %279 = vmatprep.subr.mxu0 %v337_v0  ;;  %312 = vmatprep.subr.mxu1 %v337_v0 }
  0x14   :  { %280 = vmatpush3.msra.mxu0 %v29_v17  ;;  %313 = vmatpush3.msra.mxu1 %v125_v20 }
  0x15   :  { %281 = vmatprep.subr.mxu0 %v337_v0  ;;  %314 = vmatprep.subr.mxu1 %v337_v0 }
  0x16   :  { %282 = vmatpush3.msra.mxu0 %v28_v19  ;;  %315 = vmatpush3.msra.mxu1 %v124_v22 }
  0x17   :  { %283 = vmatprep.subr.mxu0 %v337_v0  ;;  %316 = vmatprep.subr.mxu1 %v337_v0 }
  0x18   :  { %284 = vmatpush3.msra.mxu0 %v27_v21  ;;  %317 = vmatpush3.msra.mxu1 %v123_v24 }
  0x19   :  { %285 = vmatprep.subr.mxu0 %v337_v0  ;;  %318 = vmatprep.subr.mxu1 %v337_v0 }
  0x1a   :  { %286 = vmatpush3.msra.mxu0 %v26_v23  ;;  %319 = vmatpush3.msra.mxu1 %v122_v26 }
  0x1b   :  { %287 = vmatprep.subr.mxu0 %v337_v0  ;;  %320 = vmatprep.subr.mxu1 %v337_v0 }
  0x1c   :  { %288 = vmatpush3.msra.mxu0 %v25_v25  ;;  %321 = vmatpush3.msra.mxu1 %v121_v28 }
  0x1d   :  { %289 = vmatprep.subr.mxu0 %v337_v0  ;;  %322 = vmatprep.subr.mxu1 %v337_v0 }
  0x1e   :  { %290 = vmatpush3.msra.mxu0 %v24_v27  ;;  %323 = vmatpush3.msra.mxu1 %v120_v31 }
  0x1f   :  { %291 = vmatprep.subr.mxu0 %v337_v0  ;;  %324 = vmatprep.subr.mxu1 %v337_v0 }
  0x20   :  { %292 = vmatpush3.msra.mxu0 %v23_v29  ;;  %325 = vmatpush3.msra.mxu1 %v119_v32 }
  0x21   :  { %294 = vmatmul.mubr.f32.vlgmr.msra.gmra.mxu0 %v22_v30  ;;  %326 = vmatprep.subr.mxu1 %v337_v0 }
  0x22   :  { %327 = vmatpush3.msra.mxu1 %v118_v33 }
  0xe1   :  { %v112_v35 = vpop.f32.mrf.mxu0 }
  0xe2   :  { %v113_v36 = vadd.f32 %v225_v34, %v112_v35 }
  0xe3   :  { %v295_v37 = vpop.f32.mrf.mxu0 }
  0xe4   :  { %v116_v38 = vmax.f32 %v113_v36, 0.0 }
  0xe6   :  { %117 = vst [vmem:[%s523_s5] sm:$0xff] %v116_v38  ;;  %329 = vmatmul.mubr.f32.vlgmr.msra.gmra.mxu1 %v116_v38 }
 0x1a6   :  { %v207_v40 = vpop.f32.mrf.mxu1 }
 0x1a7   :  { %v208_v41 = vadd.f32 %v226_v39, %v207_v40 }
 0x1a8   :  { %v330_v42 = vpop.f32.mrf.mxu1 }
 0x1a9   :  { %v211_v43 = vsub.f32 0.0, %v208_v41 }
 0x1ab   :  { %v212_v44 = vmul.f32 1.442695, %v211_v43 }
 0x1ad   :  { %333 = vpow2.f32 %v212_v44 }
 0x1ba   :  { %v334_v45 = vpop.eup %333 }
 0x1bb   :  { %v214_v46 = vadd.f32 1.0, %v334_v45 }
 0x1bd   :  { %335 = vrcp.f32 %v214_v46 }
 0x1ca   :  { %v336_v47 = vpop.eup %335 }
 0x1cb   :  { %216 = vst [vmem:[%s525_s6] sm:$0xff] %v336_v47 }

</bundles_post_ra>
